<compile_context>
chip_gen: v7x
topology: tpu7x:2x2x1
jax: 0.10.0
libtpu: 0.0.40
codegen_flags: <defaults>
</compile_context>

<pallas_src>
import jax
import jax.numpy as jnp
from jax.experimental import pallas as pl
from jax.experimental.pallas import tpu as pltpu


def _nconv_kernel(x_ref, a_ref, o_ref):
    # x_ref: (1, bd, N)   one D-tile of one batch element
    # a_ref: (1, N,  M)   that batch element's mixing matrix (resident over D)
    # o_ref: (1, bd, M)
    o_ref[0] = jnp.dot(
        x_ref[0], a_ref[0], preferred_element_type=jnp.float32
    ).astype(o_ref.dtype)


def nconv_t2s(x, A, *, bd=None):
    """x: (B, D, N), A: (B, N, M) -> (B, D, M) == torch.einsum('bdn,bnm->bdm', x, A)."""
    B, D, N = x.shape
    _, _, M = A.shape
    if bd is None:
        # Biggest D-tile that keeps double-buffered blocks comfortably inside
        # VMEM on every generation (incl. v7x's 64 MiB); full D when small.
        bd = D if D <= 256 else 256

    grid = (B, pl.cdiv(D, bd))

    return pl.pallas_call(
        _nconv_kernel,
        out_shape=jax.ShapeDtypeStruct((B, D, M), x.dtype),
        grid_spec=pltpu.PrefetchScalarGridSpec(
            num_scalar_prefetch=0,
            grid=grid,
            in_specs=[
                pl.BlockSpec((1, bd, N), lambda b, d: (b, d, 0)),   # x tile
                pl.BlockSpec((1, N, M), lambda b, d: (b, 0, 0)),    # A (per-batch resident)
            ],
            out_specs=pl.BlockSpec((1, bd, M), lambda b, d: (b, d, 0)),
        ),
        compiler_params=pltpu.CompilerParams(
            dimension_semantics=("parallel", "parallel")),
    )(x, A)


if __name__ == "__main__":
    key = jax.random.PRNGKey(0)
    # Small but TPU-friendly shapes: M = 128 -> lane-dense output stores.
    B, D, N, M = 2, 64, 32, 128

    kx, ka = jax.random.split(key)
    x = jax.random.normal(kx, (B, D, N), dtype=jnp.float32)
    A = jax.random.normal(ka, (B, N, M), dtype=jnp.float32)

    out = jax.block_until_ready(nconv_t2s(x, A))

    # pure-JAX reference with the exact torch einsum semantics
    ref = jnp.einsum('bdn,bnm->bdm', x, A)

    assert out.shape == (B, D, M)
    assert jnp.allclose(out, ref, atol=1e-3, rtol=1e-3)
    print("KERNEL_OK")
</pallas_src>

<mosaic_0001>
module attributes {stable_mosaic.version = 11 : i64} {
  func.func @_nconv_kernel(%arg0: i32, %arg1: i32, %arg2: memref<1x64x32xf32, #tpu.memory_space<vmem>>, %arg3: memref<1x32x128xf32, #tpu.memory_space<vmem>>, %arg4: memref<1x64x128xf32, #tpu.memory_space<vmem>>) attributes {dimension_semantics = [#tpu.dimension_semantics<parallel>, #tpu.dimension_semantics<parallel>], iteration_bounds = array<i64: 2, 1>, scalar_prefetch = 0 : i64, scratch_operands = 0 : i64, tpu.core_type = #tpu.core_type<tc>, window_params = [{transform_indices = @transform_0, window_bounds = array<i64: 1, 64, 32>}, {transform_indices = @transform_1, window_bounds = array<i64: 1, 32, 128>}, {transform_indices = @transform_2, window_bounds = array<i64: 1, 64, 128>}]} {
    %c0 = arith.constant 0 : index
    %c0_0 = arith.constant 0 : index
    %c0_1 = arith.constant 0 : index
    %0 = vector.load %arg2[%c0, %c0_0, %c0_1] : memref<1x64x32xf32, #tpu.memory_space<vmem>>, vector<1x64x32xf32>
    %1 = vector.shape_cast %0 : vector<1x64x32xf32> to vector<64x32xf32>
    %c0_2 = arith.constant 0 : index
    %c0_3 = arith.constant 0 : index
    %c0_4 = arith.constant 0 : index
    %2 = vector.load %arg3[%c0_2, %c0_3, %c0_4] : memref<1x32x128xf32, #tpu.memory_space<vmem>>, vector<1x32x128xf32>
    %3 = vector.shape_cast %2 : vector<1x32x128xf32> to vector<32x128xf32>
    %cst = arith.constant dense<0.000000e+00> : vector<64x128xf32>
    %4 = tpu.matmul %1, %3, %cst {dimension_numbers = #tpu.dot_dimension_numbers<[1], [0], [0], [1], [0, 0, 1, 1], [], []>} : vector<64x32xf32>, vector<32x128xf32>, vector<64x128xf32> -> vector<64x128xf32>
    %c0_5 = arith.constant 0 : index
    %c0_6 = arith.constant 0 : index
    %c0_7 = arith.constant 0 : index
    %5 = vector.load %arg4[%c0_5, %c0_6, %c0_7] : memref<1x64x128xf32, #tpu.memory_space<vmem>>, vector<1x64x128xf32>
    %6 = vector.shape_cast %5 : vector<1x64x128xf32> to vector<64x128xf32>
    %7 = vector.shape_cast %4 : vector<64x128xf32> to vector<1x64x128xf32>
    tpu.vector_store %arg4[%c0_5, %c0_6, %c0_7], %7 {strides = array<i32>} : memref<1x64x128xf32, #tpu.memory_space<vmem>>, vector<1x64x128xf32>,
    return
  }
  func.func @transform_0(%arg0: i32, %arg1: i32) -> (i32, i32, i32) {
    %c0_i32 = arith.constant 0 : i32
    %c0_i32_0 = arith.constant 0 : i32
    return %arg0, %arg1, %c0_i32 : i32, i32, i32
  }
  func.func @transform_1(%arg0: i32, %arg1: i32) -> (i32, i32, i32) {
    %c0_i32 = arith.constant 0 : i32
    %c0_i32_0 = arith.constant 0 : i32
    %c0_i32_1 = arith.constant 0 : i32
    return %arg0, %c0_i32, %c0_i32_0 : i32, i32, i32
  }
  func.func @transform_2(%arg0: i32, %arg1: i32) -> (i32, i32, i32) {
    %c0_i32 = arith.constant 0 : i32
    %c0_i32_0 = arith.constant 0 : i32
    return %arg0, %arg1, %c0_i32 : i32, i32, i32
  }
}

</mosaic_0001>

<bundles_post_ra>
// kernel: tpu_custom_call.1
= control target key start
LH: loop header
LB: loop body
LE: loop exit
PB: predicated region body
PF: predicated region fallthrough
CT: control target
= control target key end

     0   :  { %7 = vsyncpa [#allocation3], 0  ;;  %s801_s0 = inlined_call_operand.vmem [shape: f32[2,64,32], index: 0, kind: input, shape index: {}]   ;;  %s802_s1 = inlined_call_operand.vmem [shape: f32[2,32,128], index: 1, kind: input, shape index: {}]   ;;  %s803_s2 = inlined_call_operand.hbm [shape: f32[2,64,128], index: 2, kind: output, shape index: {}]  }
   0x1   :  { %9 = vsyncpa [#allocation3 + $0x1], 0  ;;  %s675_s9 = smov 0   ;;  %s677_s10 = smov 0  }
   0x2   :  { %s679_s11 = smov 0   ;;  %s681_s12 = smov 0  }
   0x3   :  { %s683_s13 = smov 0   ;;  %s685_s14 = smov 0  }
   0x4 LB: > { %s450_s15 = sadd.s32 4294967295, %s655_s14   ;;  %s451_s16 = sadd.s32 4294967294, %s655_s14   ;;  %s655_s14 = sphi %s685_s14, %s15_s14   ;;  %s651_s13 = sphi %s683_s13, %s810_s13   ;;  %s647_s12 = sphi %s681_s12, %s809_s12   ;;  %s643_s11 = sphi %s679_s11, %s808_s11   ;;  %s639_s10 = sphi %s677_s10, %s807_s10   ;;  %s635_s9 = sphi %s675_s9, %s806_s9  }
   0x5   : > { %s27_s17 = sadd.s32 1, %s651_s13  ;;  %s90_s18 = sadd.s32 1, %s643_s11 }
   0x6   : > { %p29_p0 = scmp.ge.s32.totalorder %s27_s17, 2  ;;  %p100_p1 = scmp.ne.s32.totalorder %s643_s11, %s639_s10 }
   0x7   : > { %p101_p2 = scmp.eq.s32.totalorder %s450_s15, 1  ;;  %p106_p3 = scmp.ne.s32.totalorder %s639_s10, %s635_s9 }
   0x8   : > { %s812_s17 = smov (%p29_p0, %s27_s17), 0  ;;  %p107_p5 = scmp.eq.s32.totalorder %s451_s16, 1 }
   0x9   : > { %p715_p4 = por %p101_p2, %p100_p1  ;;  %s85_s20 = ssub.s32 %s651_s13, %s812_s17 }
   0xa   : > { %p454_p6 = scmp.ge.s32.totalorder %s655_s14, 1  ;;  %p88_p7 = scmp.eq.s32.totalorder %s85_s20, 0 }
   0xb   : > { %p722_p8 = por %p107_p5, %p106_p3  ;;  %p146_p9 = scmp.lt.s32.totalorder %s655_s14, 3 }
   0xc   : > { %s728_s22 = scalar_select %p88_p7, %s643_s11, %s90_s18  }
   0xd   : > { %p147_p10 = pnand %p454_p6, %p146_p9 }
   0xe   : > { %p178_p11 = scmp.lt.s32.totalorder (!%p147_p10), %s647_s12, 1  ;;  %vm205_vm0 = vcmask (!%p147_p10), 261120   ;;  %s174_s4 = sand.u32 (!%p147_p10), 1, %s639_s10  }
   0xf   : > { %150 = sbr.rel (%p147_p10) target bundleno = 270 (0x10e), region = 28  ;;  %s455_s5 = sshll.u32 (!%p147_p10), %s174_s4, 6 }
  0x10   : > { %s176_s6 = scalar_lea.vmem (!%p147_p10), [#allocation2], %s455_s5  ;;  %s475_s8 = sshll.u32 (!%p147_p10), %s647_s12, 10 }
  0x11   : > { %s359_s7 = sshll.u32 (!%p147_p10), %s176_s6, 4  ;;  %s753_s18 = scalar_lea.hbm (!%p147_p10), %s803_s2, %s475_s8  ;;  %s748_s7 = int_to_ptr.vmem [resolvable:$true] %s359_s7 }
  0x12   : > { %s577_s20 = scalar_lea.vmem (!%p147_p10), %s748_s7, 1024 }
  0x13   : > { %p578_p12 = scmp.ne.s32.totalorder (!%p147_p10), %s748_s7, %s577_s20 }
  0x15   : > { %p579_p13 = pnand (!%p147_p10), %p578_p12, %p715_p4 }
  0x16   : > { %s179_s23 = scalar_select %p178_p11, %s647_s12, 1 }
  0x17   : > { %s755_s12 = scalar_lea.sflag [#allocation3], %s174_s4  ;;  %p580_p0 = pneg %p579_p13 }
  0x18   : > { %s474_s24 = sshll.u32 %s179_s23, 5  ;;  %s473_s25 = sshll.u32 %s179_s23, 6 }
  0x19   : > { %s191_s28 = scalar_lea.vmem %s802_s1, %s474_s24  ;;  %s185_s3 = scalar_lea.vmem %s801_s0, %s473_s25 }
  0x1a   : > { %v201_v0 = vld [vmem:[%s191_s28] sm:$0xff]  ;;  %v202_v1 = vld [vmem:[%s191_s28 + $0x8] sm:$0xff]  ;;  %v203_v2 = vld [vmem:[%s191_s28 + $0x10] sm:$0xff]  ;;  %s657_s23 = smov [#allocation2]  }
  0x1b   : > { %v508_v3 = vpack.c.bf16 %v202_v1, %v201_v0  ;;  %v204_v4 = vld [vmem:[%s191_s28 + $0x18] sm:$0xff]  ;;  %v193_v5 = vld [vmem:[%s185_s3] sm:$0xff]  ;;  %v194_v8 = vld [vmem:[%s185_s3 + $0x8] sm:$0xff]  ;;  %s581_s24 = sshll.u32 %s657_s23, 4  ;;  %s582_s24 = int_to_ptr.vmem [resolvable:$false] %s581_s24 }
  0x1c   : > { %v197_v6 = vld [vmem:[%s185_s3 + $0x20] sm:$0xff]  ;;  %v512_v7 = vpack.c.bf16 %v204_v4, %v203_v2  ;;  %496 = vmatprep.mubr.msk.f32.mxu0 %vm205_vm0, %v193_v5  ;;  %v198_v9 = vld [vmem:[%s185_s3 + $0x28] sm:$0xff]  ;;  %v195_v10 = vld [vmem:[%s185_s3 + $0x10] sm:$0xff]  ;;  %s583_s25 = scalar_lea.vmem %s582_s24, 2048  ;;  %p584_p1 = scmp.lt.s32.totalorder %s748_s7, %s582_s24 }
  0x1d   : > { %502 = vmatprep.mubr.msk.f32.mxu1 %vm205_vm0, %v197_v6  ;;  %509 = vmatprep.subr.bf16.mxu0 %v508_v3  ;;  %v199_v11 = vld [vmem:[%s185_s3 + $0x30] sm:$0xff]  ;;  %v196_v12 = vld [vmem:[%s185_s3 + $0x18] sm:$0xff]  ;;  %p585_p2 = scmp.lt.s32.totalorder %s583_s25, %s577_s20 }
  0x1e   : > { %516 = vmatprep.subr.bf16.mxu1 %v508_v3  ;;  %511 = vmatpush3.bf16.msra.mxu0 %v508_v3  ;;  %v200_v13 = vld [vmem:[%s185_s3 + $0x38] sm:$0xff] }
  0x1f   : > { %518 = vmatpush3.bf16.msra.mxu1 %v508_v3  ;;  %513 = vmatprep.subr.bf16.mxu0 %v512_v7  ;;  %p586_p3 = por %p585_p2, %p584_p1 }
  0x20   : > { %517 = vmatprep.subr.bf16.mxu1 %v512_v7 }
  0x21   : > { %p587_p5 = pnand %p586_p3, %p580_p0 }
  0x22   : > { %515 = vmatpush3.bf16.msra.mxu0 %v512_v7 }
  0x23   : > { %519 = vmatpush3.bf16.msra.mxu1 %v512_v7 }
  0x25   : > { %497 = vmatmul.mubr.msk.f32.vlgmr.msra.gmra.mrb[0].mxu0 %vm205_vm0, %v194_v8 }
  0x26   : > { %503 = vmatmul.mubr.msk.f32.vlgmr.msra.gmra.mrb[0].mxu1 %vm205_vm0, %v198_v9  ;;  %499 = vmatprep.mubr.msk.f32.mxu0 %vm205_vm0, %v195_v10 }
  0x27   : > { %505 = vmatprep.mubr.msk.f32.mxu1 %vm205_vm0, %v199_v11 }
  0x29   : > { %500 = vmatmul.mubr.msk.f32.gmra.mrb[2].mxu0 %vm205_vm0, %v196_v12 }
  0x2a   : > { %506 = vmatmul.mubr.msk.f32.gmra.mrb[2].mxu1 %vm205_vm0, %v200_v13 }
  0xf8   : > { %v498_v14 = vpop.f32.mrb[0].mxu0 }
  0xf9   : > { %v504_v15 = vpop.f32.mrb[0].mxu1  ;;  %336 = vst [vmem:[%s176_s6 + $0x8] sm:$0xff] %v498_v14  ;;  %v296_v16 = vpop.f32.mrb[1].mxu0 }
  0xfa   : > { %340 = vst [vmem:[%s176_s6 + $0x28] sm:$0xff] %v504_v15  ;;  %v316_v17 = vpop.f32.mrb[1].mxu1  ;;  %335 = vst [vmem:[%s176_s6] sm:$0xff] %v296_v16 }
  0xfb   : > { %339 = vst [vmem:[%s176_s6 + $0x20] sm:$0xff] %v316_v17 }
  0xfc   : > { %v501_v18 = vpop.f32.mrb[2].mxu0 }
  0xfd   : > { %v507_v19 = vpop.f32.mrb[2].mxu1  ;;  %338 = vst [vmem:[%s176_s6 + $0x18] sm:$0xff] %v501_v18  ;;  %v306_v20 = vpop.f32.mrb[3].mxu0 }
  0xfe   : > { %342 = vst [vmem:[%s176_s6 + $0x38] sm:$0xff] %v507_v19  ;;  %v326_v21 = vpop.f32.mrb[3].mxu1  ;;  %337 = vst [vmem:[%s176_s6 + $0x10] sm:$0xff] %v306_v20 }
  0xff   : > { %341 = vst [vmem:[%s176_s6 + $0x30] sm:$0xff] %v326_v21 }
 0x100   : > { %590 = shalt.err (!%p587_p5)
}
 0x101   : > { %s591_s26 = scalar_lea.hbm %s753_s18, 1024  ;;  %s595_s29 = scalar_lea.hbm %s803_s2, 2048 }
 0x102   : > { %p592_p6 = scmp.ne.s32.totalorder %s753_s18, %s591_s26  ;;  %p596_p10 = scmp.lt.u32.totalorder %s753_s18, %s803_s2 }
 0x103   : > { %p597_p11 = scmp.lt.u32.totalorder %s595_s29, %s591_s26  ;;  %p599_p13 = scmp.lt.u32.totalorder %s591_s26, %s753_s18 }
 0x104   : > { %p593_p7 = pnand %p592_p6, %p715_p4 }
 0x105   : > { %p598_p12 = por %p597_p11, %p596_p10 }
 0x106   : > { %p594_p9 = pneg %p593_p7 }
 0x107   : > { %p600_p0 = por %p599_p13, %p598_p12 }
 0x109   : > { %p601_p1 = pnand %p600_p0, %p594_p9 }
 0x10b   : > { %604 = shalt.err (!%p601_p1)
}
 0x10c   : > { %s658_s4 = smov 128   ;;  %s659_s5 = smov 8  }
 0x10d   : > { %520 = dma.vmem_to_hbm [thread:$0]  (%p715_p4), %s748_s7, 1024, %s753_s18, %s755_s12, %s658_s4, %s658_s4, %s659_s5  }
 0x10e PF: > { %p526_p2 = scmp.ge.s32.totalorder %s655_s14, 2  ;;  %s374_s6 = sand.u32 1, %s635_s9  }
 0x10f   : > { %s375_s8 = scalar_lea.sflag [#allocation3], %s374_s6 }
 0x110   : > { %p523_p3 = pnand %p526_p2, %p722_p8 }
 0x112   : > { %630 = dma.done.wait (!%p523_p3), %s375_s8, 1024  }
 0x113   : > { %632 = vsyncadd (!%p523_p3), %s375_s8, 4294966272  ;;  %s15_s14 = sadd.s32 1, %s655_s14   ;;  %s806_s9 = smov %s639_s10 }
 0x114   : > { %p12_p5 = scmp.ge.s32.totalorder %s15_s14, 4   ;;  %s807_s10 = smov %s643_s11 }
 0x115   : > { %s808_s11 = smov %s728_s22  ;;  %s809_s12 = smov %s651_s13 }
 0x116   : > { %s810_s13 = smov %s812_s17  ;;  %14 = sbr.rel (!%p12_p5) target bundleno = 4 (0x4), region = 66 }
 0x11d   :  { %380 = vsyncpa [#allocation3], 1 }
 0x11e   :  { %382 = vsyncpa [#allocation3 + $0x1], 1 }

</bundles_post_ra>
